<compile_context>
chip_gen: v6e
topology: v6e:2x2x1
jax: 0.10.0
libtpu: 0.0.40
codegen_flags: <defaults>
</compile_context>

<pallas_src>
import jax
import jax.numpy as jnp
from jax.experimental import pallas as pl
from jax.experimental.pallas import tpu as pltpu

SCALE = 0.562341325123
IN_F = 12
OUT_F = 16

# Batch-fold factor: K = FOLD*12 = 192 <= 256, N = FOLD*16 = 256 -> one MXU
# pass per 8 folded rows = 128 original rows per vmatmul push.
FOLD = 16
K_F = FOLD * IN_F     # 192
N_F = FOLD * OUT_F    # 256

# Folded-batch tile: 2048 folded rows == 32768 original rows per grid step.
TBF_MAX = 2048


def _round_up(n, m):
    return ((n + m - 1) // m) * m


def _folded_linear_kernel(x_ref, w_ref, b_ref, o_ref):
    # x_ref: (tbf, 192), w_ref: (192, 256) block-diag SCALE-folded, b_ref: (1, 256)
    y = jnp.dot(
        x_ref[...],
        w_ref[...],
        preferred_element_type=jnp.float32,
        precision=jax.lax.Precision.HIGHEST,   # true-f32 MXU path -> 1e-5 tol
    )
    o_ref[...] = (y + b_ref[...]).astype(o_ref.dtype)


@jax.jit
def scaled_linear(x, weight, bias):
    """forward(x) = Linear(12,16)(x * SCALE).

    x: (B, 12) f32; weight: (16, 12) f32 (PyTorch layout); bias: (16,) f32.
    """
    B = x.shape[0]

    # ---- wrapper-side param prep (plain XLA, done once per call) -----------
    # Fold SCALE into the weight and build the block-diagonal folded weight:
    #   w_blk[i*12+a, j*16+b] = (i == j) * (SCALE * W^T)[a, b]
    w_t = (weight.astype(jnp.float32) * SCALE).T                      # (12, 16)
    eye = jnp.eye(FOLD, dtype=jnp.float32)
    w_blk = jnp.einsum("ij,ab->iajb", eye, w_t).reshape(K_F, N_F)     # (192, 256)
    b_blk = jnp.tile(bias.astype(jnp.float32), (FOLD,)).reshape(1, N_F)

    # ---- fold the batch: (B, 12) -> (B_f, 192), padded to a tile multiple --
    bf_raw = -(-B // FOLD)
    tbf = min(TBF_MAX, _round_up(bf_raw, 8))
    bf = _round_up(bf_raw, tbf)
    b_pad = bf * FOLD
    if b_pad != B:
        x = jnp.pad(x, ((0, b_pad - B), (0, 0)))
    x_f = x.reshape(bf, K_F)                                          # free reshape

    grid = (bf // tbf,)

    cost = pl.CostEstimate(
        flops=2 * bf * K_F * N_F,
        transcendentals=0,
        bytes_accessed=bf * (K_F + N_F) * 4 + (K_F * N_F + N_F) * 4,
    )

    out_f = pl.pallas_call(
        _folded_linear_kernel,
        out_shape=jax.ShapeDtypeStruct((bf, N_F), jnp.float32),
        grid_spec=pltpu.PrefetchScalarGridSpec(
            num_scalar_prefetch=0,
            grid=grid,
            in_specs=[
                pl.BlockSpec((tbf, K_F), lambda i: (i, 0)),   # x: batch-tiled
                pl.BlockSpec((K_F, N_F), lambda i: (0, 0)),   # weight: resident
                pl.BlockSpec((1, N_F), lambda i: (0, 0)),     # bias: resident
            ],
            out_specs=pl.BlockSpec((tbf, N_F), lambda i: (i, 0)),
        ),
        compiler_params=pltpu.CompilerParams(
            dimension_semantics=("parallel",),   # megacore sharding of batch axis
        ),
        cost_estimate=cost,
    )(x_f, w_blk, b_blk)

    # Un-fold (free row-major reshape) and drop padded rows.
    return out_f.reshape(b_pad, OUT_F)[:B]


if __name__ == "__main__":
    key = jax.random.PRNGKey(0)
    kx, kw, kb = jax.random.split(key, 3)

    B = 2  # small batch consistent with the module's (1, 12) input

    # Deterministic synthetic parameters (PyTorch Linear shapes: W (16,12), b (16,))
    x2 = jax.random.normal(kx, (B, IN_F), dtype=jnp.float32)
    weight = jax.random.normal(kw, (OUT_F, IN_F), dtype=jnp.float32) * 0.1
    bias = jax.random.normal(kb, (OUT_F,), dtype=jnp.float32) * 0.1

    out = scaled_linear(x2, weight, bias)
    jax.block_until_ready(out)

    # Reference check (plain JAX, original op order)
    ref = (x2 * SCALE) @ weight.T + bias
    assert out.shape == (B, OUT_F)
    assert jnp.allclose(out, ref, atol=1e-5, rtol=1e-5)

    print("KERNEL_OK")
</pallas_src>

<mosaic_0001>
module attributes {stable_mosaic.version = 11 : i64} {
  func.func @_folded_linear_kernel(%arg0: i32, %arg1: memref<8x192xf32, #tpu.memory_space<vmem>>, %arg2: memref<192x256xf32, #tpu.memory_space<vmem>>, %arg3: memref<1x256xf32, #tpu.memory_space<vmem>>, %arg4: memref<8x256xf32, #tpu.memory_space<vmem>>) attributes {dimension_semantics = [#tpu.dimension_semantics<parallel>], iteration_bounds = array<i64: 1>, scalar_prefetch = 0 : i64, scratch_operands = 0 : i64, tpu.core_type = #tpu.core_type<tc>, window_params = [{transform_indices = @transform_0, window_bounds = array<i64: 8, 192>}, {pipeline_mode = #tpu.pipeline_mode<synchronous>, transform_indices = @transform_1, window_bounds = array<i64: 192, 256>}, {pipeline_mode = #tpu.pipeline_mode<synchronous>, transform_indices = @transform_2, window_bounds = array<i64: 1, 256>}, {transform_indices = @transform_3, window_bounds = array<i64: 8, 256>}]} {
    %c0 = arith.constant 0 : index
    %c0_0 = arith.constant 0 : index
    %0 = vector.load %arg1[%c0, %c0_0] : memref<8x192xf32, #tpu.memory_space<vmem>>, vector<8x192xf32>
    %c0_1 = arith.constant 0 : index
    %c0_2 = arith.constant 0 : index
    %1 = vector.load %arg2[%c0_1, %c0_2] : memref<192x256xf32, #tpu.memory_space<vmem>>, vector<192x256xf32>
    %cst = arith.constant dense<0.000000e+00> : vector<8x256xf32>
    %2 = tpu.matmul %0, %1, %cst {dimension_numbers = #tpu.dot_dimension_numbers<[1], [0], [0], [1], [0, 0, 1, 1], [], []>, precision = #tpu.contract_precision<fp32>} : vector<8x192xf32>, vector<192x256xf32>, vector<8x256xf32> -> vector<8x256xf32>
    %c0_3 = arith.constant 0 : index
    %c0_4 = arith.constant 0 : index
    %3 = vector.load %arg3[%c0_3, %c0_4] : memref<1x256xf32, #tpu.memory_space<vmem>>, vector<1x256xf32>
    %4 = vector.broadcast %3 : vector<1x256xf32> to vector<8x256xf32>
    %5 = arith.addf %2, %4 : vector<8x256xf32>
    %c0_5 = arith.constant 0 : index
    %c0_6 = arith.constant 0 : index
    %6 = vector.load %arg4[%c0_5, %c0_6] : memref<8x256xf32, #tpu.memory_space<vmem>>, vector<8x256xf32>
    tpu.vector_store %arg4[%c0_5, %c0_6], %5 {strides = array<i32>} : memref<8x256xf32, #tpu.memory_space<vmem>>, vector<8x256xf32>,
    return
  }
  func.func @transform_0(%arg0: i32) -> (i32, i32) {
    %c0_i32 = arith.constant 0 : i32
    %c0_i32_0 = arith.constant 0 : i32
    return %arg0, %c0_i32 : i32, i32
  }
  func.func @transform_1(%arg0: i32) -> (i32, i32) {
    %c0_i32 = arith.constant 0 : i32
    %c0_i32_0 = arith.constant 0 : i32
    %c0_i32_1 = arith.constant 0 : i32
    return %c0_i32, %c0_i32_0 : i32, i32
  }
  func.func @transform_2(%arg0: i32) -> (i32, i32) {
    %c0_i32 = arith.constant 0 : i32
    %c0_i32_0 = arith.constant 0 : i32
    %c0_i32_1 = arith.constant 0 : i32
    return %c0_i32, %c0_i32_0 : i32, i32
  }
  func.func @transform_3(%arg0: i32) -> (i32, i32) {
    %c0_i32 = arith.constant 0 : i32
    %c0_i32_0 = arith.constant 0 : i32
    return %arg0, %c0_i32 : i32, i32
  }
}

</mosaic_0001>

<bundles_post_ra>
// kernel: tile.8
= control target key start
LH: loop header
LB: loop body
LE: loop exit
PB: predicated region body
PF: predicated region fallthrough
CT: control target
= control target key end

     0   :  { %s28_s0 = inlined_call_operand.vmem [shape: f32[16], index: 0, kind: input, shape index: {}]   ;;  %s29_s1 = inlined_call_operand.vmem [shape: f32[16,16], index: 1, kind: output, shape index: {}]  }
   0x1   :  { %v4_v0 = vld [vmem:[%s28_s0] ss:$0 sm:$0xff] }
   0x2   :  { %5 = vst [vmem:[%s29_s1] sm:$0xff] %v4_v0  ;;  %8 = vst [vmem:[%s29_s1 + $0x8] sm:$0xff] %v4_v0 }

// kernel: tile.9
= control target key start
LH: loop header
LB: loop body
LE: loop exit
PB: predicated region body
PF: predicated region fallthrough
CT: control target
= control target key end

     0   :  { %s7_s6 = smov 3  ;;  %s21_s9 = smov 3  ;;  %vm4_vm0 = vcmask 130048   ;;  %vm11_vm1 = vcmask 1048448   ;;  %vm18_vm2 = vcmask 917248   ;;  %vm25_vm3 = vcmask 786048   ;;  %s131_s0 = inlined_call_operand.vmem [shape: f32[16,16], index: 0, kind: input, shape index: {}]   ;;  %s132_s1 = inlined_call_operand.vmem [shape: f32[1,256], index: 1, kind: output, shape index: {}]  }
   0x1   :  { %v69_v0 = vld [vmem:[%s131_s0 + $0x7] ss:$8 sm:%s7_s6]   ;;  %s84_s10 = smov 112   ;;  %v71_v1 = vld [vmem:[%s131_s0 + $0x5] ss:$8 sm:%s21_s9]   ;;  %s14_s13 = smov 3 }
   0x2   :  { %9 = vrot.lane.b32.xlu0 %v69_v0, %s84_s10  ;;  %s85_s14 = smov 80   ;;  %v70_v2 = vld [vmem:[%s131_s0 + $0x6] ss:$8 sm:%s14_s13]   ;;  %s28_s17 = smov 3  ;;  %vm32_vm4 = vcmask 654848   ;;  %vm39_vm5 = vcmask 523648  }
   0x3   :  { %23 = vrot.lane.b32.xlu1 %v71_v1, %s85_s14  ;;  %v72_v3 = vld [vmem:[%s131_s0 + $0x4] ss:$8 sm:%s28_s17]   ;;  %s35_s20 = smov 3  ;;  %s42_s21 = smov 3  ;;  %vm46_vm6 = vcmask 392448   ;;  %vm53_vm7 = vcmask 261248  }
   0x4   :  { %s86_s22 = smov 96   ;;  %s87_s23 = smov 64   ;;  %v73_v4 = vld [vmem:[%s131_s0 + $0x3] ss:$8 sm:%s35_s20]   ;;  %v74_v5 = vld [vmem:[%s131_s0 + $0x2] ss:$8 sm:%s42_s21]  }
   0x5   :  { %s2_s26 = smov 3  ;;  %s49_s29 = smov 3 }
   0x6   :  { %16 = vrot.lane.b32.xlu0 %v70_v2, %s86_s22  ;;  %v3_v6 = vld [vmem:[%s131_s0] ss:$8 sm:%s2_s26]   ;;  %s88_s3 = smov 48   ;;  %s89_s4 = smov 32  }
   0x7   :  { %30 = vrot.lane.b32.xlu1 %v72_v3, %s87_s23  ;;  %5 = vst.msk [vmem:[#allocation0] ss:$8 sm:$0x3] %vm4_vm0, %v3_v6   ;;  %v75_v7 = vld [vmem:[%s131_s0 + $0x1] ss:$8 sm:%s49_s29]   ;;  %s90_s0 = smov 16  }
   0xa   :  { %37 = vrot.lane.b32.xlu0 %v73_v4, %s88_s3 }
   0xb   :  { %44 = vrot.lane.b32.xlu1 %v74_v5, %s89_s4 }
   0xe   :  { %51 = vrot.lane.b32.xlu0 %v75_v7, %s90_s0 }
  0x74   :  { %v10_v8 = vpop.permute.xlu0 %9  }
  0x75   :  { %12 = vst.msk [vmem:[#allocation0] ss:$8 sm:$0x3] %vm11_vm1, %v10_v8   ;;  %v24_v9 = vpop.permute.xlu1 %23  }
  0x78   :  { %v17_v10 = vpop.permute.xlu0 %16  }
  0x79   :  { %19 = vst.msk [vmem:[#allocation0] ss:$8 sm:$0x3] %vm18_vm2, %v17_v10   ;;  %v31_v11 = vpop.permute.xlu1 %30  }
  0x7a   :  { %26 = vst.msk [vmem:[#allocation0] ss:$8 sm:$0x3] %vm25_vm3, %v24_v9  }
  0x7b   :  { %33 = vst.msk [vmem:[#allocation0] ss:$8 sm:$0x3] %vm32_vm4, %v31_v11  }
  0x7c   :  { %v38_v12 = vpop.permute.xlu0 %37  }
  0x7d   :  { %40 = vst.msk [vmem:[#allocation0] ss:$8 sm:$0x3] %vm39_vm5, %v38_v12   ;;  %v45_v13 = vpop.permute.xlu1 %44  }
  0x7e   :  { %47 = vst.msk [vmem:[#allocation0] ss:$8 sm:$0x3] %vm46_vm6, %v45_v13  }
  0x80   :  { %v52_v14 = vpop.permute.xlu0 %51  }
  0x81   :  { %54 = vst.msk [vmem:[#allocation0] ss:$8 sm:$0x3] %vm53_vm7, %v52_v14  }
  0x88   :  { %v59_v15 = vld [vmem:[#allocation0] sm:$0x1]  ;;  %v64_v16 = vld [vmem:[#allocation0 + $0x8] sm:$0x1] }
  0x89   :  { %62 = vst [vmem:[%s132_s1] sm:$0x1] %v59_v15  ;;  %76 = vst [vmem:[%s132_s1 + $0x1] sm:$0x1] %v64_v16 }

// kernel: scaled_linear.1
= control target key start
LH: loop header
LB: loop body
LE: loop exit
PB: predicated region body
PF: predicated region fallthrough
CT: control target
= control target key end

     0   :  { %vm76_vm0 = vcmask 523264   ;;  %s2248_s1 = inlined_call_operand.vmem [shape: f32[192,256], index: 1, kind: input, shape index: {}]   ;;  %s2249_s0 = inlined_call_operand.vmem [shape: f32[8,192], index: 0, kind: input, shape index: {}]   ;;  %s2250_s2 = inlined_call_operand.vmem [shape: f32[1,256], index: 2, kind: input, shape index: {}]   ;;  %s2251_s3 = inlined_call_operand.vmem [shape: f32[8,256], index: 3, kind: output, shape index: {}]  }
   0x1   :  { %v47_v0 = vld [vmem:[%s2248_s1 + $0xf8] sm:$0xff]  ;;  %v46_v1 = vld [vmem:[%s2248_s1 + $0xf0] sm:$0xff]  ;;  %v45_v2 = vld [vmem:[%s2248_s1 + $0xe8] sm:$0xff] }
   0x2   :  { %v1191_v3 = vand.u32 4294901760, %v47_v0  ;;  %v1193_v4 = vand.u32 4294901760, %v46_v1  ;;  %v1195_v5 = vand.u32 4294901760, %v45_v2  ;;  %v44_v6 = vld [vmem:[%s2248_s1 + $0xe0] sm:$0xff]  ;;  %v43_v7 = vld [vmem:[%s2248_s1 + $0xd8] sm:$0xff]  ;;  %v42_v8 = vld [vmem:[%s2248_s1 + $0xd0] sm:$0xff] }
   0x3   :  { %v1206_v9 = vand.u32 4294901760, %v44_v6  ;;  %v1208_v10 = vand.u32 4294901760, %v43_v7  ;;  %v1210_v11 = vand.u32 4294901760, %v42_v8  ;;  %v41_v12 = vld [vmem:[%s2248_s1 + $0xc8] sm:$0xff]  ;;  %v40_v13 = vld [vmem:[%s2248_s1 + $0xc0] sm:$0xff]  ;;  %v39_v14 = vld [vmem:[%s2248_s1 + $0xb8] sm:$0xff] }
   0x4   :  { %81 = vmatprep.subr.mxu0 %v1191_v3  ;;  %v1222_v15 = vand.u32 4294901760, %v41_v12  ;;  %v1224_v16 = vand.u32 4294901760, %v40_v13  ;;  %v1226_v17 = vand.u32 4294901760, %v39_v14  ;;  %v1229_v18 = vsub.f32 %v47_v0, %v1191_v3  ;;  %v1234_v19 = vld [vmem:[%s2248_s1 + $0xb0] sm:$0xff]  ;;  %v1239_v20 = vld [vmem:[%s2248_s1 + $0xa8] sm:$0xff]  ;;  %v1244_v21 = vld [vmem:[%s2248_s1 + $0xa0] sm:$0xff] }
   0x5   :  { %83 = vmatpush1.msra.mxu0 %v1193_v4  ;;  %v1248_v22 = vand.u32 4294901760, %v1234_v19  ;;  %v1251_v23 = vsub.f32 %v46_v1, %v1193_v4  ;;  %v1254_v24 = vand.u32 4294901760, %v1239_v20  ;;  %v1257_v25 = vsub.f32 %v45_v2, %v1195_v5  ;;  %v1262_v26 = vld [vmem:[%s2248_s1 + $0x98] sm:$0xff]  ;;  %v1267_v27 = vld [vmem:[%s2248_s1 + $0x90] sm:$0xff]  ;;  %v1272_v28 = vld [vmem:[%s2248_s1 + $0x88] sm:$0xff] }
   0x6   :  { %2398 = vst [vmem:[#allocation2_spill] sm:$0xff] %v1229_v18  ;;  %85 = vmatprep.subr.mxu0 %v1195_v5  ;;  %v2265_v29 = vand.u32 4294901760, %v1229_v18  ;;  %v1277_v30 = vand.u32 4294901760, %v1244_v21  ;;  %v1280_v31 = vsub.f32 %v44_v6, %v1206_v9  ;;  %v1283_v32 = vand.u32 4294901760, %v1262_v26  ;;  %v1297_v37 = vld [vmem:[%s2248_s1 + $0x80] sm:$0xff]  ;;  %v1324_v46 = vld [vmem:[%s2248_s1 + $0x78] sm:$0xff] }
   0x7   :  { %2399 = vst [vmem:[#allocation3_spill] sm:$0xff] %v1254_v24  ;;  %87 = vmatpush1.msra.mxu0 %v1206_v9  ;;  %v2264_v33 = vand.u32 4294901760, %v1251_v23  ;;  %v2262_v34 = vand.u32 4294901760, %v1257_v25  ;;  %v1289_v35 = vsub.f32 %v43_v7, %v1208_v10  ;;  %v1292_v36 = vand.u32 4294901760, %v1267_v27  ;;  %v1337_v51 = vld [vmem:[%s2248_s1 + $0x70] sm:$0xff]  ;;  %v1347_v56 = vld [vmem:[%s2248_s1 + $0x68] sm:$0xff] }
   0x8   :  { %2400 = vst [vmem:[#allocation4_spill] sm:$0xff] %v1277_v30  ;;  %2401 = vst [vmem:[#allocation5_spill] sm:$0xff] %v1283_v32  ;;  %89 = vmatprep.subr.mxu0 %v1208_v10  ;;  %v212_v38 = vsub.f32 %v1229_v18, %v2265_v29  ;;  %v2261_v39 = vand.u32 4294901760, %v1280_v31  ;;  %v1305_v40 = vsub.f32 %v42_v8, %v1210_v11  ;;  %v1308_v41 = vand.u32 4294901760, %v1272_v28  ;;  %v1362_v61 = vld [vmem:[%s2248_s1 + $0x60] sm:$0xff]  ;;  %v1377_v2 = vld [vmem:[%s2248_s1 + $0x58] sm:$0xff] }
   0x9   :  { %2402 = vst [vmem:[#allocation6_spill] sm:$0xff] %v1292_v36  ;;  %91 = vmatpush1.msra.mxu0 %v1210_v11  ;;  %v218_v42 = vsub.f32 %v1251_v23, %v2264_v33  ;;  %v224_v43 = vsub.f32 %v1257_v25, %v2262_v34  ;;  %v2259_v44 = vand.u32 4294901760, %v1289_v35  ;;  %v1319_v45 = vsub.f32 %v41_v12, %v1222_v15  ;;  %v1513_v33 = vld [vmem:[%s2248_s1 + $0x18] sm:$0xff] }
   0xa   :  { %2403 = vst [vmem:[#allocation7_spill] sm:$0xff] %v1308_v41  ;;  %93 = vmatprep.subr.mxu0 %v1222_v15  ;;  %v213_v47 = vand.u32 4294901760, %v212_v38  ;;  %v230_v48 = vsub.f32 %v1280_v31, %v2261_v39  ;;  %v2257_v49 = vand.u32 4294901760, %v1305_v40  ;;  %v1332_v50 = vand.u32 4294901760, %v1297_v37 }
   0xb   :  { %95 = vmatpush1.msra.mxu0 %v1224_v16  ;;  %v219_v52 = vand.u32 4294901760, %v218_v42  ;;  %v225_v53 = vand.u32 4294901760, %v224_v43  ;;  %v236_v54 = vsub.f32 %v1289_v35, %v2259_v44  ;;  %v2256_v55 = vand.u32 4294901760, %v1319_v45  ;;  %v1486_v44 = vld [vmem:[%s2248_s1 + $0x28] sm:$0xff] }
   0xc   :  { %2404 = vst [vmem:[#allocation8_spill] sm:$0xff] %v1332_v50  ;;  %97 = vmatprep.subr.mxu0 %v1226_v17  ;;  %214 = vmatprep.subr.mxu1 %v213_v47  ;;  %v231_v57 = vand.u32 4294901760, %v230_v48  ;;  %v242_v58 = vsub.f32 %v1305_v40, %v2257_v49  ;;  %v1354_v59 = vsub.f32 %v40_v13, %v1224_v16  ;;  %v1357_v60 = vand.u32 4294901760, %v1324_v46  ;;  %v1391_v13 = vld [vmem:[%s2248_s1 + $0x50] sm:$0xff] }
   0xd   :  { %99 = vmatpush1.msra.mxu0 %v1248_v22  ;;  %220 = vmatpush1.msra.mxu1 %v219_v52  ;;  %v237_v62 = vand.u32 4294901760, %v236_v54  ;;  %v248_v63 = vsub.f32 %v1319_v45, %v2256_v55  ;;  %v1369_v0 = vsub.f32 %v39_v14, %v1226_v17  ;;  %v1372_v1 = vand.u32 4294901760, %v1337_v51  ;;  %v1470_v49 = vld [vmem:[%s2248_s1 + $0x30] sm:$0xff] }
   0xe   :  { %2405 = vst [vmem:[#allocation9_spill] sm:$0xff] %v1357_v60  ;;  %101 = vmatprep.subr.mxu0 %v1254_v24  ;;  %226 = vmatprep.subr.mxu1 %v225_v53  ;;  %v243_v6 = vand.u32 4294901760, %v242_v58  ;;  %v2254_v7 = vand.u32 4294901760, %v1354_v59  ;;  %v1383_v8 = vsub.f32 %v1234_v19, %v1248_v22  ;;  %v1386_v12 = vand.u32 4294901760, %v1347_v56 }
   0xf   :  { %2406 = vst [vmem:[#allocation10_spill] sm:$0xff] %v1372_v1  ;;  %103 = vmatpush1.msra.mxu0 %v1277_v30  ;;  %232 = vmatpush1.msra.mxu1 %v231_v57  ;;  %v249_v14 = vand.u32 4294901760, %v248_v63  ;;  %v2252_v38 = vand.u32 4294901760, %v1369_v0  ;;  %v1397_v42 = vsub.f32 %v1239_v20, %v1254_v24  ;;  %v1400_v19 = vand.u32 4294901760, %v1362_v61  ;;  %v1417_v20 = vld [vmem:[%s2248_s1 + $0x48] sm:$0xff] }
  0x10   :  { %2407 = vst [vmem:[#allocation11_spill] sm:$0xff] %v1386_v12  ;;  %105 = vmatprep.subr.mxu0 %v1283_v32  ;;  %238 = vmatprep.subr.mxu1 %v237_v62  ;;  %v254_v43 = vsub.f32 %v1354_v59, %v2254_v7  ;;  %v2253_v47 = vand.u32 4294901760, %v1383_v8  ;;  %v1409_v48 = vsub.f32 %v1244_v21, %v1277_v30  ;;  %v1412_v52 = vand.u32 4294901760, %v1377_v2 }
  0x11   :  { %2408 = vst [vmem:[#allocation12_spill] sm:$0xff] %v1400_v19  ;;  %107 = vmatpush1.msra.mxu0 %v1292_v36  ;;  %244 = vmatpush1.msra.mxu1 %v243_v6  ;;  %v260_v53 = vsub.f32 %v1369_v0, %v2252_v38  ;;  %v2255_v54 = vand.u32 4294901760, %v1397_v42  ;;  %v1426_v21 = vsub.f32 %v1262_v26, %v1283_v32  ;;  %v1429_v57 = vand.u32 4294901760, %v1391_v13  ;;  %v1443_v26 = vld [vmem:[%s2248_s1 + $0x40] sm:$0xff] }
  0x12   :  { %2409 = vst [vmem:[#allocation13_spill] sm:$0xff] %v1412_v52  ;;  %109 = vmatprep.subr.mxu0 %v1308_v41  ;;  %250 = vmatprep.subr.mxu1 %v249_v14  ;;  %v255_v58 = vand.u32 4294901760, %v254_v43  ;;  %v266_v62 = vsub.f32 %v1383_v8, %v2253_v47  ;;  %v2258_v63 = vand.u32 4294901760, %v1409_v48  ;;  %v1438_v6 = vsub.f32 %v1267_v27, %v1292_v36  ;;  %v1456_v27 = vld [vmem:[%s2248_s1 + $0x38] sm:$0xff]  ;;  %v1624_v36 = vld [vmem:[%s2248_s1 + $0x168] sm:$0xff] }
  0x13   :  { %2410 = vst [vmem:[#allocation14_spill] sm:$0xff] %v1429_v57  ;;  %111 = vmatpush1.msra.mxu0 %v1332_v50  ;;  %v261_v38 = vand.u32 4294901760, %v260_v53  ;;  %v272_v14 = vsub.f32 %v1397_v42, %v2255_v54  ;;  %v2260_v43 = vand.u32 4294901760, %v1426_v21  ;;  %v1451_v47 = vand.u32 4294901760, %v1417_v20 }
  0x14   :  { %256 = vmatpush1.msra.mxu1 %v255_v58  ;;  %113 = vmatprep.subr.mxu0 %v1357_v60  ;;  %v267_v7 = vand.u32 4294901760, %v266_v62  ;;  %v278_v53 = vsub.f32 %v1409_v48, %v2258_v63  ;;  %v2263_v54 = vand.u32 4294901760, %v1438_v6  ;;  %v1465_v55 = vsub.f32 %v1272_v28, %v1308_v41  ;;  %v1608_v41 = vld [vmem:[%s2248_s1 + $0x170] sm:$0xff] }
  0x15   :  { %2411 = vst [vmem:[#allocation15_spill] sm:$0xff] %v1451_v47  ;;  %262 = vmatprep.subr.mxu1 %v261_v38  ;;  %115 = vmatpush1.msra.mxu0 %v1372_v1  ;;  %v273_v58 = vand.u32 4294901760, %v272_v14  ;;  %v284_v62 = vsub.f32 %v1426_v21, %v2260_v43  ;;  %v1477_v63 = vand.u32 4294901760, %v1443_v26  ;;  %v1481_v28 = vsub.f32 %v1297_v37, %v1332_v50  ;;  %v1499_v37 = vld [vmem:[%s2248_s1 + $0x20] sm:$0xff] }
  0x16   :  { %268 = vmatpush1.msra.mxu1 %v267_v7  ;;  %117 = vmatprep.subr.mxu0 %v1386_v12  ;;  %v279_v38 = vand.u32 4294901760, %v278_v53  ;;  %v290_v14 = vsub.f32 %v1438_v6, %v2263_v54  ;;  %v2268_v43 = vand.u32 4294901760, %v1465_v55  ;;  %v1494_v39 = vand.u32 4294901760, %v1456_v27 }
  0x17   :  { %2412 = vst [vmem:[#allocation16_spill] sm:$0xff] %v1477_v63  ;;  %274 = vmatprep.subr.mxu1 %v273_v58  ;;  %119 = vmatpush1.msra.mxu0 %v1400_v19  ;;  %v285_v7 = vand.u32 4294901760, %v284_v62  ;;  %v2269_v53 = vand.u32 4294901760, %v1481_v28  ;;  %v1505_v34 = vsub.f32 %v1324_v46, %v1357_v60  ;;  %v1508_v54 = vand.u32 4294901760, %v1470_v49 }
  0x18   :  { %2413 = vst [vmem:[#allocation17_spill] sm:$0xff] %v1494_v39  ;;  %280 = vmatpush1.msra.mxu1 %v279_v38  ;;  %121 = vmatprep.subr.mxu0 %v1412_v52  ;;  %v291_v58 = vand.u32 4294901760, %v290_v14  ;;  %v296_v62 = vsub.f32 %v1465_v55, %v2268_v43  ;;  %v1521_v46 = vsub.f32 %v1337_v51, %v1372_v1  ;;  %v1524_v29 = vand.u32 4294901760, %v1486_v44  ;;  %v1541_v51 = vld [vmem:[%s2248_s1 + $0x10] sm:$0xff] }
  0x19   :  { %2414 = vst [vmem:[#allocation18_spill] sm:$0xff] %v1508_v54  ;;  %286 = vmatprep.subr.mxu1 %v285_v7  ;;  %123 = vmatpush1.msra.mxu0 %v1429_v57  ;;  %v302_v38 = vsub.f32 %v1481_v28, %v2269_v53  ;;  %v1533_v60 = vsub.f32 %v1347_v56, %v1386_v12  ;;  %v1536_v43 = vand.u32 4294901760, %v1499_v37  ;;  %v1550_v56 = vand.u32 4294901760, %v1513_v33  ;;  %v1555_v12 = vld [vmem:[%s2248_s1 + $0x8] sm:$0xff] }
  0x1a   :  { %2415 = vst [vmem:[#allocation19_spill] sm:$0xff] %v1524_v29  ;;  %292 = vmatpush1.msra.mxu1 %v291_v58  ;;  %125 = vmatprep.subr.mxu0 %v1451_v47  ;;  %v297_v7 = vand.u32 4294901760, %v296_v62  ;;  %v1547_v14 = vsub.f32 %v1362_v61, %v1400_v19  ;;  %v2419_v1 = vand.u32 4294901760, %v1505_v34  ;;  %v1564_v61 = vsub.f32 %v1377_v2, %v1412_v52  ;;  %v1581_v2 = vld [vmem:[%s2248_s1] sm:$0xff] }
  0x1b   :  { %2416 = vst [vmem:[#allocation20_spill] sm:$0xff] %v1536_v43  ;;  %2418 = vst [vmem:[#allocation22_spill] sm:$0xff] %v1550_v56  ;;  %127 = vmatpush1.msra.mxu0 %v1477_v63  ;;  %v303_v58 = vand.u32 4294901760, %v302_v38  ;;  %v2286_v53 = vand.u32 4294901760, %v1533_v60  ;;  %v2421_v19 = vand.u32 4294901760, %v1521_v46  ;;  %v1572_v38 = vand.u32 4294901760, %v1541_v51 }
  0x1c   :  { %2417 = vst [vmem:[#allocation21_spill] sm:$0xff] %v1547_v14  ;;  %v308_v62 = vsub.f32 %v1505_v34, %v2419_v1  ;;  %2420 = vst [vmem:[#allocation23_spill] sm:$0xff] %v1564_v61  ;;  %298 = vmatprep.subr.mxu1 %v297_v7  ;;  %129 = vmatprep.subr.mxu0 %v1494_v39  ;;  %v1576_v1 = vsub.f32 %v1391_v13, %v1429_v57  ;;  %v1589_v52 = vand.u32 4294901760, %v1555_v12  ;;  %v1594_v13 = vld [vmem:[%s2248_s1 + $0x178] sm:$0xff] }
  0x1d   :  { %v314_v50 = vsub.f32 %v1521_v46, %v2421_v19  ;;  %2422 = vst [vmem:[#allocation24_spill] sm:$0xff] %v1572_v38  ;;  %304 = vmatpush1.msra.mxu1 %v303_v58  ;;  %131 = vmatpush1.msra.mxu0 %v1508_v54  ;;  %v320_v19 = vsub.f32 %v1533_v60, %v2286_v53  ;;  %v2425_v58 = vand.u32 4294901760, %v1547_v14 }
  0x1e   :  { %2423 = vst [vmem:[#allocation25_spill] sm:$0xff] %v1576_v1  ;;  %v309_v7 = vand.u32 4294901760, %v308_v62  ;;  %2424 = vst [vmem:[#allocation26_spill] sm:$0xff] %v1589_v52  ;;  %133 = vmatprep.subr.mxu0 %v1524_v29  ;;  %v1603_v53 = vsub.f32 %v1417_v20, %v1451_v47  ;;  %v1619_v20 = vsub.f32 %v1443_v26, %v1477_v63  ;;  %v1637_v26 = vld [vmem:[%s2248_s1 + $0x160] sm:$0xff]  ;;  %v1651_v47 = vld [vmem:[%s2248_s1 + $0x158] sm:$0xff] }
  0x1f   :  { %v315_v57 = vand.u32 4294901760, %v314_v50  ;;  %v326_v62 = vsub.f32 %v1547_v14, %v2425_v58  ;;  %v321_v32 = vand.u32 4294901760, %v320_v19  ;;  %135 = vmatpush1.msra.mxu0 %v1536_v43  ;;  %v2427_v50 = vand.u32 4294901760, %v1564_v61 }
  0x20   :  { %2426 = vst [vmem:[#allocation27_spill] sm:$0xff] %v1603_v53  ;;  %310 = vmatprep.subr.mxu1 %v309_v7  ;;  %v1615_v58 = vand.u32 4294901760, %v1581_v2  ;;  %2429 = vst [vmem:[#allocation29_spill] sm:$0xff] %v1619_v20  ;;  %137 = vmatprep.subr.mxu0 %v1550_v56  ;;  %v2430_v19 = vand.u32 4294901760, %v1576_v1  ;;  %v1671_v14 = vsub.f32 %v1486_v44, %v1524_v29  ;;  %v1688_v44 = vand.u32 4294901760, %v1651_v47  ;;  %v1693_v29 = vld [vmem:[%s2248_s1 + $0x148] sm:$0xff] }
  0x21   :  { %v332_v30 = vsub.f32 %v1564_v61, %v2427_v50  ;;  %316 = vmatpush1.msra.mxu1 %v315_v57  ;;  %v327_v7 = vand.u32 4294901760, %v326_v62  ;;  %v1632_v61 = vand.u32 4294901760, %v1594_v13  ;;  %139 = vmatpush1.msra.mxu0 %v1572_v38  ;;  %v1643_v62 = vsub.f32 %v1456_v27, %v1494_v39 }
  0x22   :  { %2428 = vst [vmem:[#allocation28_spill] sm:$0xff] %v1615_v58  ;;  %v338_v50 = vsub.f32 %v1576_v1, %v2430_v19  ;;  %322 = vmatprep.subr.mxu1 %v321_v32  ;;  %v1646_v19 = vand.u32 4294901760, %v1608_v41  ;;  %141 = vmatprep.subr.mxu0 %v1589_v52  ;;  %v1659_v27 = vsub.f32 %v1470_v49, %v1508_v54  ;;  %v1662_v57 = vand.u32 4294901760, %v1624_v36  ;;  %v1679_v49 = vld [vmem:[%s2248_s1 + $0x150] sm:$0xff] }
  0x23   :  { %2431 = vst [vmem:[#allocation30_spill] sm:$0xff] %v1632_v61  ;;  %v333_v63 = vand.u32 4294901760, %v332_v30  ;;  %2432 = vst [vmem:[#allocation31_spill] sm:$0xff] %v1643_v62  ;;  %328 = vmatpush1.msra.mxu1 %v327_v7  ;;  %v2434_v30 = vand.u32 4294901760, %v1603_v53  ;;  %143 = vmatpush1.msra.mxu0 %v1615_v58  ;;  %v2437_v39 = vand.u32 4294901760, %v1619_v20 }
  0x24   :  { %2433 = vst [vmem:[#allocation32_spill] sm:$0xff] %v1646_v19  ;;  %v339_v1 = vand.u32 4294901760, %v338_v50  ;;  %2435 = vst [vmem:[#allocation33_spill] sm:$0xff] %v1659_v27  ;;  %161 = vmatprep.subr.mxu0 %v1632_v61  ;;  %v1685_v50 = vsub.f32 %v1499_v37, %v1536_v43  ;;  %v1702_v37 = vsub.f32 %v1513_v33, %v1550_v56  ;;  %v2444_v43 = vand.u32 4294901760, %v1659_v27  ;;  %v1719_v33 = vld [vmem:[%s2248_s1 + $0x140] sm:$0xff] }
  0x25   :  { %v344_v32 = vsub.f32 %v1603_v53, %v2434_v30  ;;  %2436 = vst [vmem:[#allocation34_spill] sm:$0xff] %v1662_v57  ;;  %334 = vmatprep.subr.mxu1 %v333_v63  ;;  %v350_v7 = vsub.f32 %v1619_v20, %v2437_v39  ;;  %2438 = vst [vmem:[#allocation35_spill] sm:$0xff] %v1671_v14  ;;  %v1674_v30 = vand.u32 4294901760, %v1637_v26  ;;  %163 = vmatpush2.msra.mxu0 %v1646_v19 }
  0x26   :  { %340 = vmatpush1.msra.mxu1 %v339_v1  ;;  %2440 = vst [vmem:[#allocation37_spill] sm:$0xff] %v1685_v50  ;;  %2441 = vst [vmem:[#allocation38_spill] sm:$0xff] %v1688_v44  ;;  %v2442_v1 = vand.u32 4294901760, %v1643_v62  ;;  %v2317_v39 = vand.u32 4294901760, %v1671_v14  ;;  %v362_v20 = vsub.f32 %v1659_v27, %v2444_v43  ;;  %165 = vmatprep.subr.mxu0 %v1662_v57  ;;  %v1710_v53 = vand.u32 4294901760, %v1679_v49 }
  0x27   :  { %2439 = vst [vmem:[#allocation36_spill] sm:$0xff] %v1674_v30  ;;  %v345_v63 = vand.u32 4294901760, %v344_v32  ;;  %v351_v54 = vand.u32 4294901760, %v350_v7  ;;  %2443 = vst [vmem:[#allocation39_spill] sm:$0xff] %v1702_v37  ;;  %167 = vmatpush2.msra.mxu0 %v1674_v30  ;;  %v1727_v56 = vand.u32 4294901760, %v1693_v29  ;;  %v1741_v7 = vsub.f32 %v1555_v12, %v1589_v52  ;;  %v1789_v52 = vld [vmem:[%s2248_s1 + $0x118] sm:$0xff] }
  0x28   :  { %v356_v32 = vsub.f32 %v1643_v62, %v2442_v1  ;;  %2445 = vst [vmem:[#allocation40_spill] sm:$0xff] %v1710_v53  ;;  %v1714_v1 = vsub.f32 %v1541_v51, %v1572_v38  ;;  %v368_v43 = vsub.f32 %v1671_v14, %v2317_v39  ;;  %v1732_v51 = vld [vmem:[%s2248_s1 + $0x138] sm:$0xff]  ;;  %v363_v38 = vand.u32 4294901760, %v362_v20  ;;  %169 = vmatprep.subr.mxu0 %v1688_v44  ;;  %v1746_v14 = vld [vmem:[%s2248_s1 + $0x130] sm:$0xff]  ;;  %v1762_v39 = vld [vmem:[%s2248_s1 + $0x128] sm:$0xff] }
  0x29   :  { %346 = vmatprep.subr.mxu1 %v345_v63  ;;  %2447 = vst [vmem:[#allocation42_spill] sm:$0xff] %v1727_v56  ;;  %2449 = vst [vmem:[#allocation43_spill] sm:$0xff] %v1741_v7  ;;  %v2450_v20 = vand.u32 4294901760, %v1702_v37  ;;  %171 = vmatpush2.msra.mxu0 %v1710_v53  ;;  %v1757_v12 = vsub.f32 %v1581_v2, %v1615_v58  ;;  %v1775_v2 = vld [vmem:[%s2248_s1 + $0x120] sm:$0xff] }
  0x2a   :  { %2446 = vst [vmem:[#allocation41_spill] sm:$0xff] %v1714_v1  ;;  %352 = vmatpush1.msra.mxu1 %v351_v54  ;;  %v357_v63 = vand.u32 4294901760, %v356_v32  ;;  %v2448_v54 = vand.u32 4294901760, %v1685_v50  ;;  %v369_v27 = vand.u32 4294901760, %v368_v43  ;;  %v2453_v43 = vand.u32 4294901760, %v1714_v1  ;;  %173 = vmatprep.subr.mxu0 %v1727_v56 }
  0x2b   :  { %v380_v62 = vsub.f32 %v1702_v37, %v2450_v20  ;;  %2452 = vst [vmem:[#allocation45_spill] sm:$0xff] %v1757_v12  ;;  %v1770_v37 = vand.u32 4294901760, %v1732_v51 }
  0x2c   :  { %v374_v32 = vsub.f32 %v1685_v50, %v2448_v54  ;;  %358 = vmatprep.subr.mxu1 %v357_v63  ;;  %v1753_v54 = vand.u32 4294901760, %v1719_v33  ;;  %v386_v20 = vsub.f32 %v1714_v1, %v2453_v43  ;;  %v1784_v43 = vand.u32 4294901760, %v1746_v14 }
  0x2d   :  { %364 = vmatpush1.msra.mxu1 %v363_v38  ;;  %v381_v58 = vand.u32 4294901760, %v380_v62  ;;  %v2456_v62 = vand.u32 4294901760, %v1741_v7  ;;  %v1800_v38 = vand.u32 4294901760, %v1762_v39 }
  0x2e   :  { %2451 = vst [vmem:[#allocation44_spill] sm:$0xff] %v1753_v54  ;;  %v375_v63 = vand.u32 4294901760, %v374_v32  ;;  %370 = vmatprep.subr.mxu1 %v369_v27  ;;  %175 = vmatpush2.msra.mxu0 %v1753_v54  ;;  %v1781_v32 = vsub.f32 %v1594_v13, %v1632_v61  ;;  %2455 = vst [vmem:[#allocation47_spill] sm:$0xff] %v1784_v43  ;;  %v387_v1 = vand.u32 4294901760, %v386_v20  ;;  %v2459_v61 = vand.u32 4294901760, %v1757_v12 }
  0x2f   :  { %v392_v27 = vsub.f32 %v1741_v7, %v2456_v62  ;;  %177 = vmatprep.subr.mxu0 %v1770_v37  ;;  %v1797_v13 = vsub.f32 %v1608_v41, %v1646_v19  ;;  %2458 = vst [vmem:[#allocation49_spill] sm:$0xff] %v1800_v38  ;;  %v1809_v20 = vsub.f32 %v1624_v36, %v1662_v57  ;;  %v1812_v62 = vand.u32 4294901760, %v1775_v2  ;;  %v1817_v41 = vld [vmem:[%s2248_s1 + $0x110] sm:$0xff]  ;;  %v1831_v57 = vld [vmem:[%s2248_s1 + $0x108] sm:$0xff] }
  0x30   :  { %2454 = vst [vmem:[#allocation46_spill] sm:$0xff] %v1781_v32  ;;  %376 = vmatpush1.msra.mxu1 %v375_v63  ;;  %v398_v50 = vsub.f32 %v1757_v12, %v2459_v61  ;;  %179 = vmatpush2.msra.mxu0 %v1784_v43  ;;  %v1823_v63 = vsub.f32 %v1637_v26, %v1674_v30  ;;  %v1826_v36 = vand.u32 4294901760, %v1789_v52 }
  0x31   :  { %2457 = vst [vmem:[#allocation48_spill] sm:$0xff] %v1797_v13  ;;  %382 = vmatprep.subr.mxu1 %v381_v58  ;;  %2460 = vst [vmem:[#allocation50_spill] sm:$0xff] %v1809_v20  ;;  %v393_v58 = vand.u32 4294901760, %v392_v27  ;;  %181 = vmatprep.subr.mxu0 %v1800_v38  ;;  %v2354_v61 = vand.u32 4294901760, %v1809_v20  ;;  %v1840_v26 = vsub.f32 %v1651_v47, %v1688_v44  ;;  %v2466_v30 = vand.u32 4294901760, %v1797_v13  ;;  %v1857_v47 = vld [vmem:[%s2248_s1 + $0x100] sm:$0xff] }
  0x32   :  { %2461 = vst [vmem:[#allocation51_spill] sm:$0xff] %v1812_v62  ;;  %388 = vmatpush1.msra.mxu1 %v387_v1  ;;  %2462 = vst [vmem:[#allocation52_spill] sm:$0xff] %v1823_v63  ;;  %v399_v19 = vand.u32 4294901760, %v398_v50  ;;  %v2464_v1 = vand.u32 4294901760, %v1781_v32  ;;  %183 = vmatpush2.msra.mxu0 %v1812_v62  ;;  %v1848_v50 = vand.u32 4294901760, %v1817_v41  ;;  %v1864_v44 = vand.u32 4294901760, %v1831_v57 }
  0x33   :  { %2463 = vst [vmem:[#allocation53_spill] sm:$0xff] %v1826_v36  ;;  %2465 = vst [vmem:[#allocation54_spill] sm:$0xff] %v1840_v26  ;;  %394 = vmatprep.subr.mxu1 %v393_v58  ;;  %v426_v12 = vsub.f32 %v1797_v13, %v2466_v30  ;;  %185 = vmatprep.subr.mxu0 %v1826_v36  ;;  %v432_v30 = vsub.f32 %v1809_v20, %v2354_v61  ;;  %v2468_v13 = vand.u32 4294901760, %v1823_v63  ;;  %v14_v61 = vld [vmem:[%s2249_s0] sm:$0xff] }
  0x34   :  { %v420_v27 = vsub.f32 %v1781_v32, %v2464_v1  ;;  %v1852_v1 = vsub.f32 %v1679_v49, %v1710_v53  ;;  %400 = vmatpush1.msra.mxu1 %v399_v19  ;;  %v15_v49 = vld [vmem:[%s2249_s0 + $0x8] sm:$0xff]  ;;  %187 = vmatpush2.msra.mxu0 %v1848_v50  ;;  %v1890_v19 = vsub.f32 %v1719_v33, %v1753_v54  ;;  %v1901_v33 = vand.u32 4294901760, %v14_v61 }
  0x35   :  { %v427_v53 = vand.u32 4294901760, %v426_v12  ;;  %v438_v32 = vsub.f32 %v1823_v63, %v2468_v13  ;;  %v433_v7 = vand.u32 4294901760, %v432_v30  ;;  %v2470_v12 = vand.u32 4294901760, %v1840_v26  ;;  %189 = vmatprep.subr.mxu0 %v1864_v44 }
  0x36   :  { %2467 = vst [vmem:[#allocation55_spill] sm:$0xff] %v1852_v1  ;;  %v421_v58 = vand.u32 4294901760, %v420_v27  ;;  %v1876_v27 = vsub.f32 %v1693_v29, %v1727_v56  ;;  %v1886_v13 = vand.u32 4294901760, %v1857_v47  ;;  %2471 = vst [vmem:[#allocation57_spill] sm:$0xff] %v1890_v19  ;;  %v2472_v56 = vand.u32 4294901760, %v1852_v1 }
  0x37   :  { %v444_v20 = vsub.f32 %v1840_v26, %v2470_v12  ;;  %v439_v29 = vand.u32 4294901760, %v438_v32  ;;  %v78_v63 = vsel %vm76_vm0, %v15_v49, 0  ;;  %v2366_v26 = vand.u32 4294901760, %v1890_v19  ;;  %2474 = vst [vmem:[#allocation59_spill] sm:$0xff] %v1901_v33 }
  0x38   :  { %2469 = vst [vmem:[#allocation56_spill] sm:$0xff] %v1876_v27  ;;  %422 = vmatprep.subr.mxu1 %v421_v58  ;;  %v450_v58 = vsub.f32 %v1852_v1, %v2472_v56  ;;  %v2365_v30 = vand.u32 4294901760, %v1876_v27  ;;  %191 = vmatpush2.msra.mxu0 %v1886_v13  ;;  %v1899_v24 = vand.u32 4294901760, %v78_v63  ;;  %v1908_v32 = vsub.f32 %v1732_v51, %v1770_v37 }
  0x39   :  { %428 = vmatpush2.msra.mxu1 %v427_v53  ;;  %v445_v12 = vand.u32 4294901760, %v444_v20  ;;  %524 = vmatprep.subr.mxu0 %v1229_v18  ;;  %v462_v20 = vsub.f32 %v1890_v19, %v2366_v26  ;;  %v1926_v51 = vsub.f32 %v1762_v39, %v1800_v38 }
  0x3a   :  { %434 = vmatprep.subr.mxu1 %v433_v7  ;;  %2473 = vst [vmem:[#allocation58_spill] sm:$0xff] %v1899_v24  ;;  %v451_v53 = vand.u32 4294901760, %v450_v58  ;;  %v456_v56 = vsub.f32 %v1876_v27, %v2365_v30  ;;  %2475 = vst [vmem:[#allocation60_spill] sm:$0xff] %v1908_v32  ;;  %v1913_v7 = vsub.f32 %v1746_v14, %v1784_v43  ;;  %v2367_v14 = vand.u32 4294901760, %v1908_v32 }
  0x3b   :  { %440 = vmatpush2.msra.mxu1 %v439_v29  ;;  %v1919_v49 = vsub.f32 %v78_v63, %v1899_v24  ;;  %v1922_v29 = vsub.f32 %v14_v61, %v1901_v33  ;;  %v1932_v30 = vsub.f32 %v1775_v2, %v1812_v62  ;;  %514 = vmatprep.mubr.f32.mxu1 %v1899_v24  ;;  %v463_v63 = vand.u32 4294901760, %v462_v20 }
  0x3c   :  { %2476 = vst [vmem:[#allocation61_spill] sm:$0xff] %v1913_v7  ;;  %446 = vmatprep.subr.mxu1 %v445_v12  ;;  %v457_v58 = vand.u32 4294901760, %v456_v56  ;;  %v2370_v12 = vand.u32 4294901760, %v1913_v7  ;;  %v1947_v20 = vsub.f32 %v1789_v52, %v1826_v36 }
  0x3d   :  { %452 = vmatpush2.msra.mxu1 %v451_v53  ;;  %v2373_v61 = vand.u32 4294901760, %v1919_v49  ;;  %v2380_v26 = vand.u32 4294901760, %v1922_v29  ;;  %v468_v53 = vsub.f32 %v1908_v32, %v2367_v14  ;;  %v2478_v14 = vand.u32 4294901760, %v1926_v51 }
  0x3e   :  { %458 = vmatprep.subr.mxu1 %v457_v58  ;;  %v474_v56 = vsub.f32 %v1913_v7, %v2370_v12  ;;  %2477 = vst [vmem:[#allocation62_spill] sm:$0xff] %v1947_v20  ;;  %v1960_v12 = vsub.f32 %v1817_v41, %v1848_v50 }
  0x3f   :  { %464 = vmatpush2.msra.mxu1 %v463_v63  ;;  %v195_v39 = vsub.f32 %v1919_v49, %v2373_v61  ;;  %v201_v58 = vsub.f32 %v1922_v29, %v2380_v26  ;;  %v480_v24 = vsub.f32 %v1926_v51, %v2478_v14  ;;  %v469_v2 = vand.u32 4294901760, %v468_v53 }
  0x40   :  { %2479 = vst [vmem:[#allocation63_spill] sm:$0xff] %v1960_v12  ;;  %v475_v52 = vand.u32 4294901760, %v474_v56  ;;  %v2480_v63 = vand.u32 4294901760, %v1932_v30  ;;  %v2385_v61 = vand.u32 4294901760, %v1947_v20  ;;  %v2384_v26 = vand.u32 4294901760, %v1960_v12 }
  0x41   :  { %v196_v62 = vand.u32 4294901760, %v195_v39  ;;  %v202_v38 = vand.u32 4294901760, %v201_v58  ;;  %v481_v43 = vand.u32 4294901760, %v480_v24  ;;  %470 = vmatprep.subr.mxu1 %v469_v2  ;;  %v1972_v14 = vsub.f32 %v1831_v57, %v1864_v44  ;;  %v2484_v2 = vld [vmem:[#allocation21_spill] sm:$0xff]  ;;  %v2485_v58 = vld [vmem:[#allocation4_spill] sm:$0xff] }
  0x42   :  { %v486_v36 = vsub.f32 %v1932_v30, %v2480_v63  ;;  %v492_v41 = vsub.f32 %v1947_v20, %v2385_v61  ;;  %v1976_v53 = vsub.f32 %v1857_v47, %v1886_v13  ;;  %476 = vmatpush2.msra.mxu1 %v475_v52  ;;  %v498_v24 = vsub.f32 %v1960_v12, %v2384_v26  ;;  %v2486_v52 = vld [vmem:[#allocation23_spill] sm:$0xff]  ;;  %v2487_v63 = vld [vmem:[#allocation5_spill] sm:$0xff] }
  0x43   :  { %2481 = vst [vmem:[#allocation64_spill] sm:$0xff] %v1972_v14  ;;  %197 = vmatprep.mubr.f32.mxu0 %v196_v62  ;;  %482 = vmatprep.subr.mxu1 %v481_v43  ;;  %v2383_v39 = vand.u32 4294901760, %v1972_v14  ;;  %v2498_v26 = vld [vmem:[#allocation35_spill] sm:$0xff] }
  0x44   :  { %v487_v18 = vand.u32 4294901760, %v486_v36  ;;  %2482 = vst [vmem:[#allocation65_spill] sm:$0xff] %v1976_v53  ;;  %203 = vmatmul.mubr.f32.vlgmr.msra.gmra.mxu0 %v202_v38  ;;  %v493_v36 = vand.u32 4294901760, %v492_v41  ;;  %v2382_v56 = vand.u32 4294901760, %v1976_v53  ;;  %v499_v57 = vand.u32 4294901760, %v498_v24  ;;  %v2488_v41 = vld [vmem:[#allocation25_spill] sm:$0xff] }
  0x45   :  { %527 = vmatpush1.msra.mxu0 %v1251_v23  ;;  %v504_v62 = vsub.f32 %v1972_v14, %v2383_v39  ;;  %684 = vmatprep.mubr.f32.mxu0 %v1919_v49  ;;  %v2489_v24 = vld [vmem:[#allocation6_spill] sm:$0xff]  ;;  %v2499_v61 = vld [vmem:[#allocation11_spill] sm:$0xff] }
  0x46   :  { %488 = vmatpush2.msra.mxu1 %v487_v18  ;;  %530 = vmatprep.subr.mxu0 %v1257_v25  ;;  %v510_v38 = vsub.f32 %v1976_v53, %v2382_v56  ;;  %v2483_v18 = vld [vmem:[#allocation3_spill] sm:$0xff]  ;;  %v2496_v56 = vld [vmem:[#allocation33_spill] sm:$0xff]  ;;  %v2497_v39 = vld [vmem:[#allocation10_spill] sm:$0xff] }
  0x47   :  { %494 = vmatprep.subr.mxu1 %v493_v36  ;;  %533 = vmatpush1.msra.mxu0 %v1280_v31  ;;  %v505_v43 = vand.u32 4294901760, %v504_v62  ;;  %v2490_v36 = vld [vmem:[#allocation27_spill] sm:$0xff]  ;;  %v2492_v62 = vld [vmem:[#allocation29_spill] sm:$0xff] }
  0x48   :  { %500 = vmatpush2.msra.mxu1 %v499_v57  ;;  %536 = vmatprep.subr.mxu0 %v1289_v35  ;;  %v511_v47 = vand.u32 4294901760, %v510_v38  ;;  %v2491_v57 = vld [vmem:[#allocation7_spill] sm:$0xff]  ;;  %v2493_v38 = vld [vmem:[#allocation8_spill] sm:$0xff] }
  0x49   :  { %539 = vmatpush1.msra.mxu0 %v1305_v40  ;;  %506 = vmatprep.subr.mxu1 %v505_v43  ;;  %v2494_v43 = vld [vmem:[#allocation31_spill] sm:$0xff] }
  0x4a   :  { %542 = vmatprep.subr.mxu0 %v1319_v45  ;;  %512 = vmatpush2.msra.mxu1 %v511_v47  ;;  %v2495_v47 = vld [vmem:[#allocation9_spill] sm:$0xff] }
  0x4b   :  { %545 = vmatpush1.msra.mxu0 %v1354_v59  ;;  %516 = vmatmul.mubr.f32.vlgmr.msra.gmra.mxu1 %v1901_v33  ;;  %v2500_v33 = vld [vmem:[#allocation37_spill] sm:$0xff] }
  0x4c   :  { %548 = vmatprep.subr.mxu0 %v1369_v0  ;;  %694 = vmatprep.subr.mxu1 %v1191_v3 }
  0x4d   :  { %551 = vmatpush1.msra.mxu0 %v1383_v8  ;;  %696 = vmatpush1.msra.mxu1 %v1193_v4 }
  0x4e   :  { %554 = vmatprep.subr.mxu0 %v1397_v42  ;;  %698 = vmatprep.subr.mxu1 %v1195_v5 }
  0x4f   :  { %557 = vmatpush1.msra.mxu0 %v1409_v48  ;;  %700 = vmatpush1.msra.mxu1 %v1206_v9 }
  0x50   :  { %560 = vmatprep.subr.mxu0 %v1426_v21  ;;  %702 = vmatprep.subr.mxu1 %v1208_v10 }
  0x51   :  { %563 = vmatpush1.msra.mxu0 %v1438_v6  ;;  %704 = vmatpush1.msra.mxu1 %v1210_v11 }
  0x52   :  { %566 = vmatprep.subr.mxu0 %v1465_v55  ;;  %706 = vmatprep.subr.mxu1 %v1222_v15 }
  0x53   :  { %569 = vmatpush1.msra.mxu0 %v1481_v28  ;;  %708 = vmatpush1.msra.mxu1 %v1224_v16 }
  0x54   :  { %572 = vmatprep.subr.mxu0 %v1505_v34  ;;  %710 = vmatprep.subr.mxu1 %v1226_v17 }
  0x55   :  { %575 = vmatpush1.msra.mxu0 %v1521_v46  ;;  %712 = vmatpush1.msra.mxu1 %v1248_v22 }
  0x56   :  { %578 = vmatprep.subr.mxu0 %v1533_v60  ;;  %714 = vmatprep.subr.mxu1 %v2483_v18 }
  0x57   :  { %581 = vmatpush1.msra.mxu0 %v2484_v2  ;;  %716 = vmatpush1.msra.mxu1 %v2485_v58 }
  0x58   :  { %584 = vmatprep.subr.mxu0 %v2486_v52  ;;  %718 = vmatprep.subr.mxu1 %v2487_v63 }
  0x59   :  { %587 = vmatpush1.msra.mxu0 %v2488_v41  ;;  %720 = vmatpush1.msra.mxu1 %v2489_v24 }
  0x5a   :  { %590 = vmatprep.subr.mxu0 %v2490_v36  ;;  %722 = vmatprep.subr.mxu1 %v2491_v57  ;;  %v2501_v36 = vld [vmem:[#allocation12_spill] sm:$0xff]  ;;  %v2502_v57 = vld [vmem:[#allocation39_spill] sm:$0xff] }
  0x5b   :  { %593 = vmatpush1.msra.mxu0 %v2492_v62  ;;  %724 = vmatpush1.msra.mxu1 %v2493_v38  ;;  %v2503_v62 = vld [vmem:[#allocation13_spill] sm:$0xff] }
  0x5c   :  { %596 = vmatprep.subr.mxu0 %v2494_v43  ;;  %726 = vmatprep.subr.mxu1 %v2495_v47  ;;  %v2504_v38 = vld [vmem:[#allocation41_spill] sm:$0xff]  ;;  %v2505_v43 = vld [vmem:[#allocation14_spill] sm:$0xff]  ;;  %v2506_v47 = vld [vmem:[#allocation43_spill] sm:$0xff] }
  0x5d   :  { %599 = vmatpush1.msra.mxu0 %v2496_v56  ;;  %728 = vmatpush1.msra.mxu1 %v2497_v39  ;;  %v2507_v56 = vld [vmem:[#allocation15_spill] sm:$0xff]  ;;  %v2508_v39 = vld [vmem:[#allocation45_spill] sm:$0xff] }
  0x5e   :  { %602 = vmatprep.subr.mxu0 %v2498_v26  ;;  %730 = vmatprep.subr.mxu1 %v2499_v61  ;;  %v2509_v26 = vld [vmem:[#allocation16_spill] sm:$0xff]  ;;  %v2510_v61 = vld [vmem:[#allocation46_spill] sm:$0xff] }
  0x5f   :  { %605 = vmatpush1.msra.mxu0 %v2500_v33  ;;  %732 = vmatpush1.msra.mxu1 %v2501_v36  ;;  %v2511_v33 = vld [vmem:[#allocation17_spill] sm:$0xff]  ;;  %v2512_v36 = vld [vmem:[#allocation48_spill] sm:$0xff] }
  0x60   :  { %608 = vmatprep.subr.mxu0 %v2502_v57  ;;  %734 = vmatprep.subr.mxu1 %v2503_v62  ;;  %v2513_v57 = vld [vmem:[#allocation18_spill] sm:$0xff] }
  0x61   :  { %611 = vmatpush1.msra.mxu0 %v2504_v38  ;;  %736 = vmatpush1.msra.mxu1 %v2505_v43  ;;  %v2514_v62 = vld [vmem:[#allocation50_spill] sm:$0xff]  ;;  %v2515_v38 = vld [vmem:[#allocation19_spill] sm:$0xff]  ;;  %v2516_v43 = vld [vmem:[#allocation52_spill] sm:$0xff] }
  0x62   :  { %614 = vmatprep.subr.mxu0 %v2506_v47  ;;  %738 = vmatprep.subr.mxu1 %v2507_v56  ;;  %v2517_v47 = vld [vmem:[#allocation20_spill] sm:$0xff]  ;;  %v2518_v56 = vld [vmem:[#allocation54_spill] sm:$0xff] }
  0x63   :  { %617 = vmatpush1.msra.mxu0 %v2508_v39  ;;  %740 = vmatpush1.msra.mxu1 %v2509_v26  ;;  %v2519_v39 = vld [vmem:[#allocation22_spill] sm:$0xff] }
  0x64   :  { %636 = vmatprep.subr.mxu0 %v2510_v61  ;;  %742 = vmatprep.subr.mxu1 %v2511_v33  ;;  %v2520_v61 = vld [vmem:[#allocation24_spill] sm:$0xff] }
  0x65   :  { %639 = vmatpush2.msra.mxu0 %v2512_v36  ;;  %744 = vmatpush1.msra.mxu1 %v2513_v57  ;;  %v2521_v36 = vld [vmem:[#allocation26_spill] sm:$0xff] }
  0x66   :  { %642 = vmatprep.subr.mxu0 %v2514_v62  ;;  %746 = vmatprep.subr.mxu1 %v2515_v38  ;;  %v2522_v62 = vld [vmem:[#allocation28_spill] sm:$0xff] }
  0x67   :  { %645 = vmatpush2.msra.mxu0 %v2516_v43  ;;  %748 = vmatpush1.msra.mxu1 %v2517_v47  ;;  %v2523_v43 = vld [vmem:[#allocation30_spill] sm:$0xff] }
  0x68   :  { %648 = vmatprep.subr.mxu0 %v2518_v56  ;;  %750 = vmatprep.subr.mxu1 %v2519_v39  ;;  %v2524_v56 = vld [vmem:[#allocation32_spill] sm:$0xff] }
  0x69   :  { %651 = vmatpush2.msra.mxu0 %v1852_v1  ;;  %752 = vmatpush1.msra.mxu1 %v2520_v61  ;;  %v2525_v1 = vld [vmem:[#allocation34_spill] sm:$0xff] }
  0x6a   :  { %654 = vmatprep.subr.mxu0 %v1876_v27  ;;  %754 = vmatprep.subr.mxu1 %v2521_v36  ;;  %v2526_v27 = vld [vmem:[#allocation36_spill] sm:$0xff] }
  0x6b   :  { %657 = vmatpush2.msra.mxu0 %v1890_v19  ;;  %756 = vmatpush1.msra.mxu1 %v2522_v62  ;;  %v2527_v19 = vld [vmem:[#allocation38_spill] sm:$0xff] }
  0x6c   :  { %660 = vmatprep.subr.mxu0 %v1908_v32  ;;  %774 = vmatprep.subr.mxu1 %v2523_v43  ;;  %v2528_v32 = vld [vmem:[#allocation40_spill] sm:$0xff] }
  0x6d   :  { %663 = vmatpush2.msra.mxu0 %v1913_v7  ;;  %776 = vmatpush2.msra.mxu1 %v2524_v56  ;;  %v2529_v7 = vld [vmem:[#allocation42_spill] sm:$0xff] }
  0x6e   :  { %666 = vmatprep.subr.mxu0 %v1926_v51  ;;  %778 = vmatprep.subr.mxu1 %v2525_v1 }
  0x6f   :  { %669 = vmatpush2.msra.mxu0 %v1932_v30  ;;  %780 = vmatpush2.msra.mxu1 %v2526_v27  ;;  %v2530_v27 = vld [vmem:[#allocation2_spill] sm:$0xff] }
  0x70   :  { %672 = vmatprep.subr.mxu0 %v1947_v20  ;;  %782 = vmatprep.subr.mxu1 %v2527_v19  ;;  %v2531_v20 = vand.u32 4294901760, %v2530_v27  ;;  %v2532_v19 = vld [vmem:[#allocation47_spill] sm:$0xff]  ;;  %v2539_v27 = vand.u32 4294901760, %v1289_v35  ;;  %v2544_v35 = vand.u32 4294901760, %v1922_v29 }
  0x71   :  { %675 = vmatpush2.msra.mxu0 %v1960_v12  ;;  %784 = vmatpush2.msra.mxu1 %v2528_v32  ;;  %v2533_v12 = vand.u32 4294901760, %v1251_v23  ;;  %v2534_v32 = vld [vmem:[#allocation49_spill] sm:$0xff]  ;;  %v2540_v23 = vand.u32 4294901760, %v1305_v40  ;;  %v2546_v40 = vand.u32 4294901760, %v1383_v8 }
  0x72   :  { %678 = vmatprep.subr.mxu0 %v1972_v14  ;;  %786 = vmatprep.subr.mxu1 %v2529_v7  ;;  %v2535_v7 = vand.u32 4294901760, %v1257_v25  ;;  %v2538_v14 = vld [vmem:[#allocation53_spill] sm:$0xff]  ;;  %v2541_v25 = vand.u32 4294901760, %v1319_v45  ;;  %v2547_v45 = vand.u32 4294901760, %v1397_v42  ;;  %v2564_v42 = vld [vmem:[#allocation8_spill] sm:$0xff] }
  0x73   :  { %681 = vmatpush2.msra.mxu0 %v1976_v53  ;;  %788 = vmatpush2.msra.mxu1 %v1753_v54  ;;  %v2536_v53 = vld [vmem:[#allocation51_spill] sm:$0xff]  ;;  %v2537_v54 = vand.u32 4294901760, %v1280_v31  ;;  %v2542_v31 = vand.u32 4294901760, %v1919_v49  ;;  %v2570_v49 = vld [vmem:[#allocation10_spill] sm:$0xff] }
  0x74   :  { %687 = vmatmul.mubr.f32.vlgmr.msra.gmra.mxu0 %v1922_v29  ;;  %790 = vmatprep.subr.mxu1 %v1770_v37  ;;  %v2571_v29 = vld [vmem:[#allocation35_spill] sm:$0xff] }
  0x75   :  { %821 = vmatprep.subr.mxu0 %v2531_v20  ;;  %792 = vmatpush2.msra.mxu1 %v2532_v19  ;;  %v2573_v20 = vld [vmem:[#allocation11_spill] sm:$0xff] }
  0x76   :  { %825 = vmatpush1.msra.mxu0 %v2533_v12  ;;  %794 = vmatprep.subr.mxu1 %v2534_v32  ;;  %v2572_v12 = vand.u32 4294901760, %v2571_v29 }
  0x77   :  { %829 = vmatprep.subr.mxu0 %v2535_v7  ;;  %796 = vmatpush2.msra.mxu1 %v2536_v53  ;;  %v2545_v7 = vand.u32 4294901760, %v1369_v0  ;;  %v2549_v0 = vand.u32 4294901760, %v1426_v21 }
  0x78   :  { %833 = vmatpush1.msra.mxu0 %v2537_v54  ;;  %798 = vmatprep.subr.mxu1 %v2538_v14  ;;  %v2543_v54 = vand.u32 4294901760, %v1354_v59  ;;  %v2548_v59 = vand.u32 4294901760, %v1409_v48  ;;  %v2565_v48 = vld [vmem:[#allocation31_spill] sm:$0xff] }
  0x79   :  { %837 = vmatprep.subr.mxu0 %v2539_v27  ;;  %800 = vmatpush2.msra.mxu1 %v1848_v50  ;;  %v2566_v21 = vand.u32 4294901760, %v2565_v48  ;;  %v2619_v48 = vld [vmem:[#allocation42_spill] sm:$0xff] }
  0x7a   :  { %841 = vmatpush1.msra.mxu0 %v2540_v23  ;;  %802 = vmatprep.subr.mxu1 %v1864_v44  ;;  %v2582_v23 = vld [vmem:[#allocation14_spill] sm:$0xff] }
  0x7b   :  { %845 = vmatprep.subr.mxu0 %v2541_v25  ;;  %804 = vmatpush2.msra.mxu1 %v1886_v13  ;;  %v2583_v25 = vld [vmem:[#allocation43_spill] sm:$0xff] }
  0x7c   :  { %808 = vmatprep.mubr.f32.mxu1 %v2542_v31  ;;  %849 = vmatpush1.msra.mxu0 %v2543_v54  ;;  %v2584_v31 = vand.u32 4294901760, %v2583_v25  ;;  %v2585_v54 = vld [vmem:[#allocation15_spill] sm:$0xff] }
  0x7d   :  { %812 = vmatmul.mubr.f32.vlgmr.msra.gmra.mxu1 %v2544_v35  ;;  %853 = vmatprep.subr.mxu0 %v2545_v7  ;;  %v2586_v35 = vld [vmem:[#allocation45_spill] sm:$0xff] }
  0x7e   :  { %1036 = vmatprep.subr.mxu1 %v1191_v3  ;;  %857 = vmatpush1.msra.mxu0 %v2546_v40  ;;  %v2550_v3 = vand.u32 4294901760, %v1438_v6  ;;  %v2567_v6 = vld [vmem:[#allocation9_spill] sm:$0xff]  ;;  %v2587_v7 = vand.u32 4294901760, %v2586_v35  ;;  %v2588_v40 = vld [vmem:[#allocation46_spill] sm:$0xff] }
  0x7f   :  { %1038 = vmatpush1.msra.mxu1 %v1193_v4  ;;  %861 = vmatprep.subr.mxu0 %v2547_v45  ;;  %v2551_v4 = vand.u32 4294901760, %v1465_v55  ;;  %v2561_v55 = vld [vmem:[#allocation7_spill] sm:$0xff]  ;;  %v2589_v45 = vand.u32 4294901760, %v2588_v40 }
  0x80   :  { %1040 = vmatprep.subr.mxu1 %v1195_v5  ;;  %865 = vmatpush1.msra.mxu0 %v2548_v59  ;;  %v2552_v5 = vand.u32 4294901760, %v1481_v28  ;;  %v2568_v28 = vld [vmem:[#allocation33_spill] sm:$0xff]  ;;  %v2590_v59 = vld [vmem:[#allocation48_spill] sm:$0xff] }
  0x81   :  { %1042 = vmatpush1.msra.mxu1 %v1206_v9  ;;  %869 = vmatprep.subr.mxu0 %v2549_v0  ;;  %v2553_v9 = vand.u32 4294901760, %v1505_v34  ;;  %v2591_v0 = vand.u32 4294901760, %v2590_v59 }
  0x82   :  { %1044 = vmatprep.subr.mxu1 %v1208_v10  ;;  %873 = vmatpush1.msra.mxu0 %v2550_v3  ;;  %v2554_v10 = vand.u32 4294901760, %v1521_v46  ;;  %v2569_v46 = vand.u32 4294901760, %v2568_v28  ;;  %v2592_v3 = vld [vmem:[#allocation50_spill] sm:$0xff]  ;;  %v2624_v28 = vld [vmem:[#allocation59_spill] sm:$0xff] }
  0x83   :  { %1046 = vmatpush1.msra.mxu1 %v1210_v11  ;;  %877 = vmatprep.subr.mxu0 %v2551_v4  ;;  %v2555_v11 = vand.u32 4294901760, %v1533_v60  ;;  %v2562_v60 = vld [vmem:[#allocation29_spill] sm:$0xff]  ;;  %v2593_v4 = vand.u32 4294901760, %v2592_v3 }
  0x84   :  { %1048 = vmatprep.subr.mxu1 %v1222_v15  ;;  %881 = vmatpush1.msra.mxu0 %v2552_v5  ;;  %v2556_v15 = vand.u32 4294901760, %v2484_v2  ;;  %v2563_v8 = vand.u32 4294901760, %v2562_v60  ;;  %v2594_v5 = vld [vmem:[#allocation52_spill] sm:$0xff]  ;;  %v2613_v60 = vld [vmem:[#allocation38_spill] sm:$0xff] }
  0x85   :  { %1050 = vmatpush1.msra.mxu1 %v1224_v16  ;;  %885 = vmatprep.subr.mxu0 %v2553_v9  ;;  %v2557_v16 = vand.u32 4294901760, %v2486_v52  ;;  %v2577_v52 = vld [vmem:[#allocation39_spill] sm:$0xff]  ;;  %v2595_v9 = vand.u32 4294901760, %v2594_v5 }
  0x86   :  { %1052 = vmatprep.subr.mxu1 %v1226_v17  ;;  %889 = vmatpush1.msra.mxu0 %v2554_v10  ;;  %v2558_v17 = vand.u32 4294901760, %v2488_v41  ;;  %v2579_v41 = vld [vmem:[#allocation13_spill] sm:$0xff] }
  0x87   :  { %1054 = vmatpush1.msra.mxu1 %v1248_v22  ;;  %893 = vmatprep.subr.mxu0 %v2555_v11  ;;  %v2559_v22 = vld [vmem:[#allocation27_spill] sm:$0xff] }
  0x88   :  { %1056 = vmatprep.subr.mxu1 %v2483_v18  ;;  %897 = vmatpush1.msra.mxu0 %v2556_v15  ;;  %v2560_v34 = vand.u32 4294901760, %v2559_v22  ;;  %v2574_v18 = vld [vmem:[#allocation37_spill] sm:$0xff] }
  0x89   :  { %1058 = vmatpush1.msra.mxu1 %v2485_v58  ;;  %901 = vmatprep.subr.mxu0 %v2557_v16  ;;  %v2575_v2 = vand.u32 4294901760, %v2574_v18  ;;  %v2576_v58 = vld [vmem:[#allocation12_spill] sm:$0xff] }
  0x8a   :  { %1060 = vmatprep.subr.mxu1 %v2487_v63  ;;  %905 = vmatpush1.msra.mxu0 %v2558_v17  ;;  %v2578_v63 = vand.u32 4294901760, %v2577_v52 }
  0x8b   :  { %1062 = vmatpush1.msra.mxu1 %v2489_v24  ;;  %909 = vmatprep.subr.mxu0 %v2560_v34  ;;  %v2580_v24 = vld [vmem:[#allocation41_spill] sm:$0xff]  ;;  %v2610_v34 = vld [vmem:[#allocation36_spill] sm:$0xff] }
  0x8c   :  { %1064 = vmatprep.subr.mxu1 %v2561_v55  ;;  %913 = vmatpush1.msra.mxu0 %v2563_v8  ;;  %v2581_v27 = vand.u32 4294901760, %v2580_v24 }
  0x8d   :  { %1066 = vmatpush1.msra.mxu1 %v2564_v42  ;;  %917 = vmatprep.subr.mxu0 %v2566_v21  ;;  %v2616_v42 = vld [vmem:[#allocation40_spill] sm:$0xff]  ;;  %v2622_v21 = vld [vmem:[#allocation58_spill] sm:$0xff] }
  0x8e   :  { %1068 = vmatprep.subr.mxu1 %v2567_v6  ;;  %921 = vmatpush1.msra.mxu0 %v2569_v46  ;;  %v2623_v6 = vld [vmem:[#allocation44_spill] sm:$0xff]  ;;  %v66_v46 = vlaneseq }
  0x8f   :  { %1070 = vmatpush1.msra.mxu1 %v2570_v49  ;;  %925 = vmatprep.subr.mxu0 %v2572_v12 }
  0x90   :  { %1072 = vmatprep.subr.mxu1 %v2573_v20  ;;  %929 = vmatpush1.msra.mxu0 %v2575_v2 }
  0x91   :  { %1074 = vmatpush1.msra.mxu1 %v2576_v58  ;;  %933 = vmatprep.subr.mxu0 %v2578_v63 }
  0x92   :  { %1076 = vmatprep.subr.mxu1 %v2579_v41  ;;  %937 = vmatpush1.msra.mxu0 %v2581_v27 }
  0x93   :  { %1078 = vmatpush1.msra.mxu1 %v2582_v23  ;;  %941 = vmatprep.subr.mxu0 %v2584_v31 }
  0x94   :  { %1080 = vmatprep.subr.mxu1 %v2585_v54  ;;  %945 = vmatpush1.msra.mxu0 %v2587_v7 }
  0x95   :  { %1082 = vmatpush1.msra.mxu1 %v2509_v26  ;;  %965 = vmatprep.subr.mxu0 %v2589_v45  ;;  %v2596_v26 = vld [vmem:[#allocation54_spill] sm:$0xff] }
  0x96   :  { %1084 = vmatprep.subr.mxu1 %v2511_v33  ;;  %969 = vmatpush2.msra.mxu0 %v2591_v0  ;;  %v2597_v10 = vand.u32 4294901760, %v2596_v26  ;;  %v2598_v33 = vld [vmem:[#allocation55_spill] sm:$0xff] }
  0x97   :  { %1086 = vmatpush1.msra.mxu1 %v2513_v57  ;;  %973 = vmatprep.subr.mxu0 %v2593_v4  ;;  %v2599_v11 = vand.u32 4294901760, %v2598_v33  ;;  %v2600_v57 = vld [vmem:[#allocation56_spill] sm:$0xff] }
  0x98   :  { %1088 = vmatprep.subr.mxu1 %v2515_v38  ;;  %977 = vmatpush2.msra.mxu0 %v2595_v9  ;;  %v2601_v15 = vand.u32 4294901760, %v2600_v57  ;;  %v2602_v38 = vld [vmem:[#allocation57_spill] sm:$0xff] }
  0x99   :  { %1090 = vmatpush1.msra.mxu1 %v2517_v47  ;;  %981 = vmatprep.subr.mxu0 %v2597_v10  ;;  %v2603_v16 = vand.u32 4294901760, %v2602_v38  ;;  %v2604_v47 = vld [vmem:[#allocation60_spill] sm:$0xff] }
  0x9a   :  { %1092 = vmatprep.subr.mxu1 %v2519_v39  ;;  %985 = vmatpush2.msra.mxu0 %v2599_v11  ;;  %v2605_v17 = vand.u32 4294901760, %v2604_v47  ;;  %v2606_v39 = vld [vmem:[#allocation61_spill] sm:$0xff] }
  0x9b   :  { %1094 = vmatpush1.msra.mxu1 %v2520_v61  ;;  %989 = vmatprep.subr.mxu0 %v2601_v15  ;;  %v2607_v22 = vand.u32 4294901760, %v2606_v39  ;;  %v2608_v61 = vand.u32 4294901760, %v1926_v51 }
  0x9c   :  { %1096 = vmatprep.subr.mxu1 %v2521_v36  ;;  %993 = vmatpush2.msra.mxu0 %v2603_v16  ;;  %v2609_v36 = vand.u32 4294901760, %v1932_v30 }
  0x9d   :  { %1098 = vmatpush1.msra.mxu1 %v2522_v62  ;;  %997 = vmatprep.subr.mxu0 %v2605_v17  ;;  %v2611_v62 = vld [vmem:[#allocation62_spill] sm:$0xff] }
  0x9e   :  { %1116 = vmatprep.subr.mxu1 %v2523_v43  ;;  %1001 = vmatpush2.msra.mxu0 %v2607_v22  ;;  %v2612_v55 = vand.u32 4294901760, %v2611_v62  ;;  %v2614_v43 = vld [vmem:[#allocation63_spill] sm:$0xff] }
  0x9f   :  { %1118 = vmatpush2.msra.mxu1 %v2524_v56  ;;  %1005 = vmatprep.subr.mxu0 %v2608_v61  ;;  %v2615_v8 = vand.u32 4294901760, %v2614_v43  ;;  %v2617_v56 = vld [vmem:[#allocation64_spill] sm:$0xff] }
  0xa0   :  { %1120 = vmatprep.subr.mxu1 %v2525_v1  ;;  %1009 = vmatpush2.msra.mxu0 %v2609_v36  ;;  %v2618_v51 = vand.u32 4294901760, %v2617_v56  ;;  %v2620_v1 = vld [vmem:[#allocation65_spill] sm:$0xff] }
  0xa1   :  { %1122 = vmatpush2.msra.mxu1 %v2610_v34  ;;  %1013 = vmatprep.subr.mxu0 %v2612_v55  ;;  %v2621_v30 = vand.u32 4294901760, %v2620_v1 }
  0xa2   :  { %1124 = vmatprep.subr.mxu1 %v2613_v60  ;;  %1017 = vmatpush2.msra.mxu0 %v2615_v8 }
  0xa3   :  { %1126 = vmatpush2.msra.mxu1 %v2616_v42  ;;  %1021 = vmatprep.subr.mxu0 %v2618_v51 }
  0xa4   :  { %1128 = vmatprep.subr.mxu1 %v2619_v48  ;;  %1025 = vmatpush2.msra.mxu0 %v2621_v30 }
  0xa5   :  { %1027 = vmatprep.mubr.f32.mxu0 %v2622_v21  ;;  %1130 = vmatpush2.msra.mxu1 %v2623_v6 }
  0xa6   :  { %1029 = vmatmul.mubr.f32.vlgmr.msra.gmra.mxu0 %v2624_v28  ;;  %1132 = vmatprep.subr.mxu1 %v1770_v37  ;;  %v67_v37 = vshrl.u32 %v66_v46, 7 }
  0xa7   :  { %1148 = vmatprep.mubr.f32.mxu1 %v2622_v21  ;;  %1134 = vmatpush2.msra.mxu1 %v2532_v19  ;;  %v64_v19 = vld [vmem:[%s2250_s2] sm:$0x3] }
  0xa8   :  { %1136 = vmatprep.subr.mxu1 %v2534_v32  ;;  %v68_v49 = vsub.s32 0, %v67_v37  ;;  %v72_v29 = vsub.s32 1, %v67_v37 }
  0xa9   :  { %1138 = vmatpush2.msra.mxu1 %v2536_v53 }
  0xaa   :  { %1140 = vmatprep.subr.mxu1 %v2538_v14  ;;  %v69_v53 = vrot.slane %v64_v19, %v68_v49  ;;  %v73_v20 = vrot.slane %v64_v19, %v72_v29 }
  0xab   :  { %1142 = vmatpush2.msra.mxu1 %v1848_v50 }
  0xac   :  { %1144 = vmatprep.subr.mxu1 %v1864_v44 }
  0xad   :  { %1146 = vmatpush2.msra.mxu1 %v1886_v13 }
  0xae   :  { %1150 = vmatmul.mubr.f32.vlgmr.msra.gmra.mxu1 %v2624_v28 }
 0x104   :  { %v204_v32 = vpop.f32.mrf.mxu0 }
 0x105   :  { %v205_v18 = vadd.f32 %v204_v32, %v69_v53 }
 0x106   :  { %v206_v12 = vpop.f32.mrf.mxu0 }
 0x107   :  { %v207_v2 = vadd.f32 %v206_v12, %v73_v20 }
 0x10b   :  { %v517_v14 = vpop.f32.mrf.mxu1 }
 0x10c   :  { %v518_v52 = vadd.f32 %v517_v14, %v205_v18 }
 0x10d   :  { %v519_v44 = vpop.f32.mrf.mxu1 }
 0x10e   :  { %v520_v41 = vadd.f32 %v519_v44, %v207_v2 }
 0x134   :  { %v688_v50 = vpop.f32.mrf.mxu0 }
 0x135   :  { %v689_v24 = vadd.f32 %v688_v50, %v518_v52 }
 0x136   :  { %v690_v13 = vpop.f32.mrf.mxu0 }
 0x137   :  { %v691_v23 = vadd.f32 %v690_v13, %v520_v41 }
 0x13d   :  { %v813_v58 = vpop.f32.mrf.mxu1 }
 0x13e   :  { %v814_v25 = vadd.f32 %v813_v58, %v689_v24 }
 0x13f   :  { %v815_v27 = vpop.f32.mrf.mxu1 }
 0x140   :  { %v816_v54 = vadd.f32 %v815_v27, %v691_v23 }
 0x166   :  { %v1030_v63 = vpop.f32.mrf.mxu0 }
 0x167   :  { %v1031_v35 = vadd.f32 %v1030_v63, %v814_v25 }
 0x168   :  { %v1032_v31 = vpop.f32.mrf.mxu0 }
 0x169   :  { %v1033_v40 = vadd.f32 %v1032_v31, %v816_v54 }
 0x16e   :  { %v1151_v7 = vpop.f32.mrf.mxu1 }
 0x16f   :  { %v1152_v45 = vadd.f32 %v1151_v7, %v1031_v35 }
 0x170   :  { %v1153_v59 = vpop.f32.mrf.mxu1 }
 0x171   :  { %1156 = vst [vmem:[%s2251_s3] sm:$0xff] %v1152_v45  ;;  %v1154_v0 = vadd.f32 %v1153_v59, %v1033_v40 }
 0x173   :  { %1157 = vst [vmem:[%s2251_s3 + $0x8] sm:$0xff] %v1154_v0 }

</bundles_post_ra>
